<compile_context>
chip_gen: v7x
topology: tpu7x:2x2x1
jax: 0.10.0
libtpu: 0.0.40
codegen_flags: <defaults>
</compile_context>

<pallas_src>
import functools

import jax
import jax.numpy as jnp
from jax.experimental import pallas as pl
from jax.experimental.pallas import tpu as pltpu

_SUBLANE = 8
_LANE = 128


def _round_up(x, m):
    return ((x + m - 1) // m) * m


def _bow_kernel(idx_ref, emb_ref, out_ref, acc_ref, *, scale, tv, token_chunk):
    """One (bag-block i, vocab-tile k) grid step."""
    k = pl.program_id(1)

    @pl.when(k == 0)
    def _init():
        acc_ref[...] = jnp.zeros_like(acc_ref)

    idx = idx_ref[...]                                   # (BB, Tp) int32
    bb, tp = idx.shape

    # Index 0 is padding: remap to -1 so it never matches any vocab tile.
    # (cheap (BB, Tp) select, replaces a per-tile (BB, TV) mask)
    local = jnp.where(idx == 0, -1, idx) - k * tv        # (BB, Tp)

    # Histogram of this vocab tile, accumulated over small token chunks so the
    # one-hot working set is (BB, token_chunk, TV), never (BB, T, V).
    counts = jnp.zeros((bb, tv), jnp.float32)
    for c in range(tp // token_chunk):
        chunk = local[:, c * token_chunk:(c + 1) * token_chunk]   # (BB, TC)
        iota_v = jax.lax.broadcasted_iota(jnp.int32, (bb, token_chunk, tv), 2)
        onehot = (chunk[:, :, None] == iota_v).astype(jnp.float32)
        counts = counts + jnp.sum(onehot, axis=1)                 # (BB, TV)

    # counts @ emb_tile == sum_t [idx_t in this tile, idx_t != 0] * E[idx_t]
    acc_ref[...] += jnp.dot(counts, emb_ref[...],
                            preferred_element_type=jnp.float32)

    @pl.when(k == pl.num_programs(1) - 1)
    def _finalize():
        res = acc_ref[...]
        if scale != 1.0:          # static python float; mean -> scale once here
            res = res * scale
        out_ref[...] = res.astype(out_ref.dtype)


def flat_sum_bow(trees, embedding_table, *, mean=False, node=True):
    """Pallas implementation of FlatSumBow.forward.

    trees: (B, N) or (B, Tr, N) integer indices
    embedding_table: (V, D) float32
    returns: (B, D) if node=True else (B, Tr, D)
    """
    trees = trees.astype(jnp.int32)
    vocab, dim = embedding_table.shape

    if node:
        bags = trees.shape[0]
        flat = trees.reshape(bags, -1)
        final_shape = (bags, dim)
    else:
        assert trees.ndim == 3, "node=False requires (batch, tree, node) input"
        b, tr, n = trees.shape
        bags = b * tr
        flat = trees.reshape(bags, n)
        final_shape = (b, tr, dim)

    tokens = flat.shape[1]
    scale = (1.0 / tokens) if mean else 1.0   # mean divides by pre-padding T

    # ---- tile-size selection -------------------------------------------
    # Output / embedding last dim padded to a lane multiple (dense stores).
    dp = _round_up(dim, _LANE)
    # Bag block: fill the MXU M dimension; never larger than the bag count.
    bb = min(128, _round_up(bags, _SUBLANE))
    padded_bags = _round_up(bags, bb)
    # Vocab tile: stream the table; keep each (TV, Dp) f32 tile <= ~4 MiB so
    # the double-buffered pipeline fits comfortably even in v7x's 64 MiB VMEM.
    tv_cap = max(_SUBLANE, ((4 << 20) // (dp * 4)) // _SUBLANE * _SUBLANE)
    tv = min(512, tv_cap, _round_up(vocab, _SUBLANE))
    padded_vocab = _round_up(vocab, tv)
    # Token chunk for the in-kernel histogram loop.
    tc = 8
    padded_tokens = _round_up(tokens, tc)

    # ---- padding (index-0 / zero-row pads contribute nothing) -----------
    if padded_bags != bags or padded_tokens != tokens:
        flat = jnp.pad(flat, ((0, padded_bags - bags),
                              (0, padded_tokens - tokens)))
    emb = embedding_table
    if padded_vocab != vocab or dp != dim:
        emb = jnp.pad(emb, ((0, padded_vocab - vocab), (0, dp - dim)))

    grid = (padded_bags // bb, padded_vocab // tv)

    out = pl.pallas_call(
        functools.partial(_bow_kernel, scale=scale, tv=tv, token_chunk=tc),
        out_shape=jax.ShapeDtypeStruct((padded_bags, dp), jnp.float32),
        grid_spec=pltpu.PrefetchScalarGridSpec(
            num_scalar_prefetch=0,
            grid=grid,
            in_specs=[
                pl.BlockSpec((bb, padded_tokens), lambda i, k: (i, 0)),  # idx
                pl.BlockSpec((tv, dp), lambda i, k: (k, 0)),             # table tile
            ],
            out_specs=pl.BlockSpec((bb, dp), lambda i, k: (i, 0)),
            scratch_shapes=[pltpu.VMEM((bb, dp), jnp.float32)],
        ),
        compiler_params=pltpu.CompilerParams(
            dimension_semantics=("parallel", "arbitrary")),
    )(flat, emb)

    return out[:bags, :dim].reshape(final_shape)


def flat_sum_bow_ref(trees, emb, *, mean=False, node=True):
    """Pure-JAX reference mirroring the PyTorch module semantics."""
    trees = trees.astype(jnp.int32)
    tree_size = 1 if (node and trees.ndim == 2) else trees.shape[1]
    batch_size, node_size = trees.shape[0], trees.shape[-1]
    flat = trees.reshape(batch_size, -1)
    reps = emb[flat]                                       # (B, L, D)
    reps = jnp.where((flat == 0)[..., None], 0.0, reps)
    reps = reps.reshape(batch_size, tree_size, node_size, emb.shape[1])
    dims = (1, 2) if node else (2,)
    return reps.mean(axis=dims) if mean else reps.sum(axis=dims)


if __name__ == "__main__":
    key = jax.random.PRNGKey(0)
    k_emb, k_tree2d, k_tree3d = jax.random.split(key, 3)

    vocab, dim = 32, 32
    batch, tree, node_sz = 2, 3, 8

    # deterministic "nn.Embedding(vocab, dim)" weights
    embedding_table = jax.random.normal(k_emb, (vocab, dim), dtype=jnp.float32)

    trees_2d = jax.random.randint(k_tree2d, (batch, node_sz), 0, vocab)
    trees_3d = jax.random.randint(k_tree3d, (batch, tree, node_sz), 0, vocab)

    cases = [
        (trees_2d, dict(mean=False, node=True)),
        (trees_3d, dict(mean=False, node=True)),
        (trees_3d, dict(mean=True, node=True)),
        (trees_3d, dict(mean=False, node=False)),
        (trees_3d, dict(mean=True, node=False)),
    ]

    for x, kw in cases:
        out = flat_sum_bow(x, embedding_table, **kw)
        out = jax.block_until_ready(out)
        ref = flat_sum_bow_ref(x, embedding_table, **kw)
        assert out.shape == ref.shape, (out.shape, ref.shape)
        assert jnp.allclose(out, ref, atol=1e-5, rtol=1e-5), (kw, out, ref)

    print("KERNEL_OK")
</pallas_src>

<mosaic_0001>
module attributes {stable_mosaic.version = 11 : i64} {
  func.func @_bow_kernel(%arg0: i32, %arg1: i32, %arg2: memref<8x8xi32, #tpu.memory_space<vmem>>, %arg3: memref<32x128xf32, #tpu.memory_space<vmem>>, %arg4: memref<8x128xf32, #tpu.memory_space<vmem>>, %arg5: memref<8x128xf32, #tpu.memory_space<vmem>>) attributes {dimension_semantics = [#tpu.dimension_semantics<parallel>, #tpu.dimension_semantics<arbitrary>], iteration_bounds = array<i64: 1, 1>, scalar_prefetch = 0 : i64, scratch_operands = 1 : i64, tpu.core_type = #tpu.core_type<tc>, window_params = [{transform_indices = @transform_0, window_bounds = array<i64: 8, 8>}, {transform_indices = @transform_1, window_bounds = array<i64: 32, 128>}, {transform_indices = @transform_2, window_bounds = array<i64: 8, 128>}]} {
    %c0_i32 = arith.constant 0 : i32
    %0 = arith.cmpi eq, %arg1, %c0_i32 : i32
    %1 = arith.extui %0 : i1 to i32
    %c0_i32_0 = arith.constant 0 : i32
    %2 = arith.cmpi ne, %1, %c0_i32_0 : i32
    scf.if %2 {
      %cst_13 = arith.constant 0.000000e+00 : f32
      %28 = vector.broadcast %cst_13 : f32 to vector<8x128xf32>
      %c0_14 = arith.constant 0 : index
      %c0_15 = arith.constant 0 : index
      %29 = vector.load %arg5[%c0_14, %c0_15] : memref<8x128xf32, #tpu.memory_space<vmem>>, vector<8x128xf32>
      tpu.vector_store %arg5[%c0_14, %c0_15], %28 {strides = array<i32>} : memref<8x128xf32, #tpu.memory_space<vmem>>, vector<8x128xf32>,
    } else {
    }
    %c0 = arith.constant 0 : index
    %c0_1 = arith.constant 0 : index
    %3 = vector.load %arg2[%c0, %c0_1] : memref<8x8xi32, #tpu.memory_space<vmem>>, vector<8x8xi32>
    %c0_i32_2 = arith.constant 0 : i32
    %4 = vector.broadcast %c0_i32_2 : i32 to vector<8x8xi32>
    %5 = arith.cmpi eq, %3, %4 : vector<8x8xi32>
    %c-1_i32 = arith.constant -1 : i32
    %6 = vector.broadcast %c-1_i32 : i32 to vector<8x8xi32>
    %7 = arith.select %5, %6, %3 : vector<8x8xi1>, vector<8x8xi32>
    %c32_i32 = arith.constant 32 : i32
    %8 = arith.muli %arg1, %c32_i32 : i32
    %9 = vector.broadcast %8 : i32 to vector<8x8xi32>
    %10 = arith.subi %7, %9 : vector<8x8xi32>
    %cst = arith.constant 0.000000e+00 : f32
    %11 = vector.broadcast %cst : f32 to vector<8x32xf32>
    %12 = tpu.iota {dimensions = array<i32: 2>} : vector<8x8x32xi32>
    %13 = vector.shape_cast %10 : vector<8x8xi32> to vector<8x8x1xi32>
    %14 = vector.broadcast %13 : vector<8x8x1xi32> to vector<8x8x32xi32>
    %15 = arith.cmpi eq, %14, %12 : vector<8x8x32xi32>
    %16 = arith.extui %15 : vector<8x8x32xi1> to vector<8x8x32xi32>
    %17 = arith.sitofp %16 : vector<8x8x32xi32> to vector<8x8x32xf32>
    %cst_3 = arith.constant dense<0.000000e+00> : vector<8x32xf32>
    %18 = vector.multi_reduction <add>, %17, %cst_3 [1] : vector<8x8x32xf32> to vector<8x32xf32>
    %19 = arith.addf %11, %18 : vector<8x32xf32>
    %c0_4 = arith.constant 0 : index
    %c0_5 = arith.constant 0 : index
    %20 = vector.load %arg5[%c0_4, %c0_5] : memref<8x128xf32, #tpu.memory_space<vmem>>, vector<8x128xf32>
    %c0_6 = arith.constant 0 : index
    %c0_7 = arith.constant 0 : index
    %21 = vector.load %arg3[%c0_6, %c0_7] : memref<32x128xf32, #tpu.memory_space<vmem>>, vector<32x128xf32>
    %cst_8 = arith.constant dense<0.000000e+00> : vector<8x128xf32>
    %22 = tpu.matmul %19, %21, %cst_8 {dimension_numbers = #tpu.dot_dimension_numbers<[1], [0], [0], [1], [0, 0, 1, 1], [], []>} : vector<8x32xf32>, vector<32x128xf32>, vector<8x128xf32> -> vector<8x128xf32>
    %23 = arith.addf %20, %22 : vector<8x128xf32>
    %c0_9 = arith.constant 0 : index
    %c0_10 = arith.constant 0 : index
    %24 = vector.load %arg5[%c0_9, %c0_10] : memref<8x128xf32, #tpu.memory_space<vmem>>, vector<8x128xf32>
    tpu.vector_store %arg5[%c0_9, %c0_10], %23 {strides = array<i32>} : memref<8x128xf32, #tpu.memory_space<vmem>>, vector<8x128xf32>,
    %c0_i32_11 = arith.constant 0 : i32
    %25 = arith.cmpi eq, %arg1, %c0_i32_11 : i32
    %26 = arith.extui %25 : i1 to i32
    %c0_i32_12 = arith.constant 0 : i32
    %27 = arith.cmpi ne, %26, %c0_i32_12 : i32
    scf.if %27 {
      %c0_13 = arith.constant 0 : index
      %c0_14 = arith.constant 0 : index
      %28 = vector.load %arg5[%c0_13, %c0_14] : memref<8x128xf32, #tpu.memory_space<vmem>>, vector<8x128xf32>
      %c0_15 = arith.constant 0 : index
      %c0_16 = arith.constant 0 : index
      %29 = vector.load %arg4[%c0_15, %c0_16] : memref<8x128xf32, #tpu.memory_space<vmem>>, vector<8x128xf32>
      tpu.vector_store %arg4[%c0_15, %c0_16], %28 {strides = array<i32>} : memref<8x128xf32, #tpu.memory_space<vmem>>, vector<8x128xf32>,
    } else {
    }
    return
  }
  func.func @transform_0(%arg0: i32, %arg1: i32) -> (i32, i32) {
    %c0_i32 = arith.constant 0 : i32
    %c0_i32_0 = arith.constant 0 : i32
    return %arg0, %c0_i32 : i32, i32
  }
  func.func @transform_1(%arg0: i32, %arg1: i32) -> (i32, i32) {
    %c0_i32 = arith.constant 0 : i32
    %c0_i32_0 = arith.constant 0 : i32
    return %arg1, %c0_i32 : i32, i32
  }
  func.func @transform_2(%arg0: i32, %arg1: i32) -> (i32, i32) {
    %c0_i32 = arith.constant 0 : i32
    %c0_i32_0 = arith.constant 0 : i32
    return %arg0, %c0_i32 : i32, i32
  }
}

</mosaic_0001>

<bundles_post_ra>
// kernel: tpu_custom_call.1
= control target key start
LH: loop header
LB: loop body
LE: loop exit
PB: predicated region body
PF: predicated region fallthrough
CT: control target
= control target key end

     0   :  { %7 = vsyncpa [#allocation4], 0  ;;  %s506_s0 = inlined_call_operand.hbm [shape: s32[8,8], index: 0, kind: input, shape index: {}]   ;;  %s507_s1 = inlined_call_operand.hbm [shape: f32[32,128], index: 1, kind: input, shape index: {}]   ;;  %s508_s2 = inlined_call_operand.hbm [shape: f32[8,128], index: 2, kind: output, shape index: {}]  }
   0x1   :  { %8 = vsyncpa [#allocation7], 0 }
   0x2   :  { %9 = vsyncpa [#allocation5], 0  ;;  %s429_s9 = smov [#allocation3]   ;;  %s430_s11 = smov [#allocation6]  }
   0x3   :  { %s16_s10 = sshll.u32 %s429_s9, 4  ;;  %s25_s12 = sshll.u32 %s430_s11, 4  ;;  %s17_s10 = int_to_ptr.vmem [resolvable:$true] %s16_s10  ;;  %s452_s12 = int_to_ptr.vmem [resolvable:$true] %s25_s12 }
   0x4   :  { %s357_s15 = scalar_lea.hbm %s506_s0, 128 }
   0x5   :  { %p358_p0 = scmp.ne.s32.totalorder %s506_s0, %s357_s15  ;;  %p361_p1 = scmp.lt.u32.totalorder %s357_s15, %s506_s0 }
   0x7   :  { %p363_p2 = pnand %p361_p1, %p358_p0 }
   0x9   :  { %366 = shalt.err (!%p363_p2)
}
   0xa   :  { %s367_s20 = scalar_lea.vmem %s17_s10, 128  ;;  %p372_p4 = scmp.lt.s32.totalorder %s17_s10, %s17_s10 }
   0xb   :  { %p368_p3 = scmp.ne.s32.totalorder %s17_s10, %s367_s20  ;;  %p373_p5 = scmp.lt.s32.totalorder %s367_s20, %s367_s20 }
   0xd   :  { %p374_p6 = por %p373_p5, %p372_p4 }
   0xf   :  { %p375_p7 = pnand %p374_p6, %p368_p3 }
  0x11   :  { %378 = shalt.err (!%p375_p7)
}
  0x12   :  { %19 = dma.hbm_to_vmem [thread:$0]  %s506_s0, 128, %s17_s10, [#allocation4]  }
  0x13   :  { %s379_s25 = scalar_lea.hbm %s507_s1, 512 }
  0x14   :  { %p380_p8 = scmp.ne.s32.totalorder %s507_s1, %s379_s25  ;;  %p383_p9 = scmp.lt.u32.totalorder %s379_s25, %s507_s1 }
  0x16   :  { %p385_p10 = pnand %p383_p9, %p380_p8 }
  0x18   :  { %388 = shalt.err (!%p385_p10)
}
  0x19   :  { %s389_s30 = scalar_lea.vmem %s452_s12, 512  ;;  %p394_p12 = scmp.lt.s32.totalorder %s452_s12, %s452_s12 }
  0x1a   :  { %p390_p11 = scmp.ne.s32.totalorder %s452_s12, %s389_s30  ;;  %p395_p13 = scmp.lt.s32.totalorder %s389_s30, %s389_s30 }
  0x1c   :  { %p396_p0 = por %p395_p13, %p394_p12 }
  0x1e   :  { %p397_p1 = pnand %p396_p0, %p390_p11 }
  0x20   :  { %400 = shalt.err (!%p397_p1)
}
  0x21   :  { %s431_s0 = smov 128   ;;  %s432_s3 = smov 8  }
  0x22   :  { %31 = dma.hbm_to_vmem [thread:$0]  %s507_s1, 512, %s452_s12, [#allocation7], %s431_s0, %s431_s0, %s432_s3  }
  0x23   :  { %423 = dma.done.wait [#allocation4], 128  }
  0x24   :  { %424 = vsyncadd [#allocation4], 4294967168 }
  0x25   :  { %425 = dma.done.wait [#allocation7], 512  }
  0x26   :  { %426 = vsyncadd [#allocation7], 4294966784  ;;  %v49_v0 = vlaneseq  ;;  %v43_v4 = vld [vmem:[#allocation3] sm:$0xff]  ;;  %v197_v20 = vld [vmem:[#allocation6] sm:$0xff]  ;;  %v433_v23 = vmov 0.0|0.0   ;;  %vm434_vm1 = vmmov 0  }
  0x27   :  { %vm44_vm0 = vcmp.eq.s32.totalorder %v43_v4, 0  ;;  %v198_v21 = vld [vmem:[#allocation6 + $0x8] sm:$0xff]  ;;  %343 = vmatprep.subr.bf16.mxu0 %v433_v23  ;;  %v199_v24 = vld [vmem:[#allocation6 + $0x10] sm:$0xff]  ;;  %v200_v25 = vld [vmem:[#allocation6 + $0x18] sm:$0xff]  ;;  %v435_v27 = vmov 0.0   ;;  %vm131_vm2 = vcmask 261120  }
  0x28   :  { %v52_v1 = vshrl.u32 %v49_v0, 7  ;;  %v45_v7 = vsel %vm44_vm0, 4294967295, %v43_v4  ;;  %v344_v22 = vpack.c.bf16 %v198_v21, %v197_v20  ;;  %v347_v26 = vpack.c.bf16 %v200_v25, %v199_v24  ;;  %340 = vmatprep.mubr.msk.f32.mxu0 %vm434_vm1, %v435_v27  ;;  %s436_s1 = smov [#allocation8]  }
  0x29   :  { %v50_v28 = vand.u32 127, %v49_v0  ;;  %vm209_vm9 = vcmask 1041409   ;;  %vm211_vm12 = vcmask 1042434   ;;  %vm213_vm13 = vcmask 1043459   ;;  %s308_s6 = sshll.u32 %s436_s1, 4  ;;  %s309_s6 = int_to_ptr.vmem [resolvable:$true] %s308_s6 }
  0x2a   :  { %v67_v2 = vsub.s32 2, %v52_v1  ;;  %v53_v3 = vsub.s32 0, %v52_v1  ;;  %v74_v5 = vsub.s32 3, %v52_v1  ;;  %v60_v6 = vsub.s32 1, %v52_v1  ;;  %345 = vmatpush3.bf16.msra.mxu0 %v344_v22  ;;  %s401_s7 = scalar_lea.vmem %s309_s6, 128  ;;  %p406_p3 = scmp.lt.s32.totalorder %s309_s6, %s309_s6 }
  0x2b   :  { %v88_v12 = vsub.s32 5, %v52_v1  ;;  %v81_v13 = vsub.s32 4, %v52_v1  ;;  %v102_v16 = vsub.s32 7, %v52_v1  ;;  %v95_v17 = vsub.s32 6, %v52_v1  ;;  %346 = vmatprep.subr.bf16.mxu0 %v433_v23  ;;  %p402_p2 = scmp.ne.s32.totalorder %s309_s6, %s401_s7  ;;  %p407_p4 = scmp.lt.s32.totalorder %s401_s7, %s401_s7 }
  0x2c   :  { %v68_v8 = vrot.slane %v45_v7, %v67_v2  ;;  %v54_v9 = vrot.slane %v45_v7, %v53_v3  ;;  %v75_v10 = vrot.slane %v45_v7, %v74_v5  ;;  %v61_v11 = vrot.slane %v45_v7, %v60_v6 }
  0x2d   :  { %v89_v14 = vrot.slane %v45_v7, %v88_v12  ;;  %v82_v15 = vrot.slane %v45_v7, %v81_v13  ;;  %v103_v18 = vrot.slane %v45_v7, %v102_v16  ;;  %v96_v19 = vrot.slane %v45_v7, %v95_v17  ;;  %p408_p5 = por %p407_p4, %p406_p3 }
  0x2e   :  { %70 = vbcast.lane.b32.xlu1 %v68_v8, 256  ;;  %56 = vbcast.lane.b32.xlu0 %v54_v9, 256  ;;  %vm215_vm14 = vcmask 1044484   ;;  %vm217_vm15 = vcmask 1045509   ;;  %vm219_vm0 = vcmask 1046534   ;;  %vm221_vm1 = vcmask 1047559  }
  0x2f   :  { %348 = vmatpush3.bf16.msra.mxu0 %v347_v26  ;;  %p409_p6 = pnand %p408_p5, %p402_p2 }
  0x32   :  { %77 = vbcast.lane.b32.xlu1 %v75_v10, 256  ;;  %63 = vbcast.lane.b32.xlu0 %v61_v11, 256 }
  0x36   :  { %91 = vbcast.lane.b32.xlu1 %v89_v14, 256  ;;  %84 = vbcast.lane.b32.xlu0 %v82_v15, 256 }
  0x3a   :  { %105 = vbcast.lane.b32.xlu1 %v103_v18, 256  ;;  %98 = vbcast.lane.b32.xlu0 %v96_v19, 256 }
  0xa0   :  { %v71_v29 = vpop.permute.xlu1 %70  ;;  %v57_v30 = vpop.permute.xlu0 %56 }
  0xa1   :  { %vm109_vm3 = vcmp.eq.s32.totalorder %v71_v29, %v50_v28  ;;  %vm107_vm4 = vcmp.eq.s32.totalorder %v57_v30, %v50_v28 }
  0xa2   :  { %v320_v31 = vsel %vm109_vm3, 1.0, %v435_v27  ;;  %v318_v32 = vsel %vm107_vm4, 1.0, %v435_v27 }
  0xa3   :  { %v146_v33 = vsel %vm131_vm2, %v320_v31, 0.0  ;;  %v132_v34 = vsel %vm131_vm2, %v318_v32, 0.0 }
  0xa4   :  { %v147_v35 = vrot.slane %v146_v33, 4  ;;  %v133_v36 = vrot.slane %v132_v34, 4  ;;  %v78_v37 = vpop.permute.xlu1 %77  ;;  %v64_v38 = vpop.permute.xlu0 %63 }
  0xa5   :  { %vm110_vm5 = vcmp.eq.s32.totalorder %v78_v37, %v50_v28  ;;  %vm108_vm6 = vcmp.eq.s32.totalorder %v64_v38, %v50_v28 }
  0xa6   :  { %v148_v39 = vadd.f32 %v147_v35, %v146_v33  ;;  %v134_v40 = vadd.f32 %v133_v36, %v132_v34  ;;  %v321_v41 = vsel %vm110_vm5, 1.0, %v435_v27  ;;  %v319_v42 = vsel %vm108_vm6, 1.0, %v435_v27 }
  0xa7   :  { %v153_v43 = vsel %vm131_vm2, %v321_v41, 0.0  ;;  %v139_v44 = vsel %vm131_vm2, %v319_v42, 0.0 }
  0xa8   :  { %v149_v45 = vrot.slane %v148_v39, 2  ;;  %v135_v46 = vrot.slane %v134_v40, 2  ;;  %v154_v47 = vrot.slane %v153_v43, 4  ;;  %v140_v48 = vrot.slane %v139_v44, 4  ;;  %v92_v49 = vpop.permute.xlu1 %91  ;;  %v85_v50 = vpop.permute.xlu0 %84 }
  0xa9   :  { %vm112_vm7 = vcmp.eq.s32.totalorder %v92_v49, %v50_v28  ;;  %vm111_vm8 = vcmp.eq.s32.totalorder %v85_v50, %v50_v28 }
  0xaa   :  { %v150_v51 = vadd.f32 %v149_v45, %v148_v39  ;;  %v136_v52 = vadd.f32 %v135_v46, %v134_v40  ;;  %v155_v53 = vadd.f32 %v154_v47, %v153_v43  ;;  %v141_v54 = vadd.f32 %v140_v48, %v139_v44 }
  0xab   :  { %v323_v55 = vsel %vm112_vm7, 1.0, %v435_v27  ;;  %v322_v56 = vsel %vm111_vm8, 1.0, %v435_v27 }
  0xac   :  { %v156_v57 = vrot.slane %v155_v53, 2  ;;  %v142_v58 = vrot.slane %v141_v54, 2  ;;  %v106_v59 = vpop.permute.xlu1 %105  ;;  %v99_v60 = vpop.permute.xlu0 %98  ;;  %v167_v61 = vsel %vm131_vm2, %v323_v55, 0.0  ;;  %v160_v62 = vsel %vm131_vm2, %v322_v56, 0.0 }
  0xad   :  { %vm114_vm10 = vcmp.eq.s32.totalorder %v106_v59, %v50_v28  ;;  %vm113_vm11 = vcmp.eq.s32.totalorder %v99_v60, %v50_v28  ;;  %v151_v63 = vrot.slane %v150_v51, 1  ;;  %v137_v0 = vrot.slane %v136_v52, 1 }
  0xae   :  { %v157_v1 = vadd.f32 %v156_v57, %v155_v53  ;;  %v143_v2 = vadd.f32 %v142_v58, %v141_v54  ;;  %v168_v3 = vrot.slane %v167_v61, 4  ;;  %v161_v4 = vrot.slane %v160_v62, 4 }
  0xaf   :  { %v325_v5 = vsel %vm114_vm10, 1.0, %v435_v27  ;;  %v324_v6 = vsel %vm113_vm11, 1.0, %v435_v27  ;;  %v152_v14 = vadd.f32 %v151_v63, %v150_v51  ;;  %v138_v15 = vadd.f32 %v137_v0, %v136_v52 }
  0xb0   :  { %v144_v7 = vrot.slane %v143_v2, 1  ;;  %v181_v8 = vsel %vm131_vm2, %v325_v5, 0.0  ;;  %v174_v9 = vsel %vm131_vm2, %v324_v6, 0.0  ;;  %v169_v10 = vadd.f32 %v168_v3, %v167_v61 }
  0xb1   :  { %v162_v11 = vadd.f32 %v161_v4, %v160_v62  ;;  %v182_v12 = vrot.slane %v181_v8, 4  ;;  %v175_v13 = vrot.slane %v174_v9, 4  ;;  %v158_v16 = vrot.slane %v157_v1, 1 }
  0xb2   :  { %v145_v17 = vadd.f32 %v144_v7, %v143_v2  ;;  %v170_v18 = vrot.slane %v169_v10, 2 }
  0xb3   :  { %v163_v19 = vrot.slane %v162_v11, 2  ;;  %v183_v20 = vadd.f32 %v182_v12, %v181_v8  ;;  %v176_v21 = vadd.f32 %v175_v13, %v174_v9  ;;  %v159_v27 = vadd.f32 %v158_v16, %v157_v1 }
  0xb4   :  { %v210_v22 = vsel %vm209_vm9, %v145_v17, %v138_v15  ;;  %v171_v24 = vadd.f32 %v170_v18, %v169_v10 }
  0xb5   :  { %v212_v23 = vsel %vm211_vm12, %v152_v14, %v210_v22  ;;  %v164_v25 = vadd.f32 %v163_v19, %v162_v11  ;;  %v184_v26 = vrot.slane %v183_v20, 2  ;;  %v177_v28 = vrot.slane %v176_v21, 2 }
  0xb6   :  { %v172_v29 = vrot.slane %v171_v24, 1  ;;  %v214_v33 = vsel %vm213_vm13, %v159_v27, %v212_v23 }
  0xb7   :  { %v165_v30 = vrot.slane %v164_v25, 1  ;;  %v185_v31 = vadd.f32 %v184_v26, %v183_v20  ;;  %v178_v32 = vadd.f32 %v177_v28, %v176_v21 }
  0xb8   :  { %v173_v34 = vadd.f32 %v172_v29, %v171_v24 }
  0xb9   :  { %v166_v35 = vadd.f32 %v165_v30, %v164_v25  ;;  %v186_v36 = vrot.slane %v185_v31, 1  ;;  %v179_v37 = vrot.slane %v178_v32, 1 }
  0xbb   :  { %v187_v38 = vadd.f32 %v186_v36, %v185_v31  ;;  %v216_v39 = vsel %vm215_vm14, %v166_v35, %v214_v33  ;;  %v180_v40 = vadd.f32 %v179_v37, %v178_v32 }
  0xbc   :  { %v218_v41 = vsel %vm217_vm15, %v173_v34, %v216_v39 }
  0xbd   :  { %v220_v42 = vsel %vm219_vm0, %v180_v40, %v218_v41 }
  0xbe   :  { %v222_v43 = vsel %vm221_vm1, %v187_v38, %v220_v42 }
  0xbf   :  { %341 = vmatmul.mubr.msk.f32.vlgmr.msra.gmra.mrb[0].mxu0 %vm131_vm2, %v222_v43 }
 0x192   :  { %v291_v44 = vpop.f32.mrb[0].mxu0 }
 0x193   :  { %301 = vst [vmem:[#allocation8] sm:$0xff] %v291_v44  ;;  %v342_v45 = vpop.f32.mrb[1].mxu0 }
 0x194   :  { %412 = shalt.err (!%p409_p6)
}
 0x195   :  { %s413_s10 = scalar_lea.hbm %s508_s2, 128 }
 0x196   :  { %p414_p7 = scmp.ne.s32.totalorder %s508_s2, %s413_s10  ;;  %p417_p8 = scmp.lt.u32.totalorder %s413_s10, %s508_s2 }
 0x198   :  { %p419_p9 = pnand %p417_p8, %p414_p7 }
 0x19a   :  { %422 = shalt.err (!%p419_p9)
}
 0x19b   :  { %311 = dma.vmem_to_hbm [thread:$0]  %s309_s6, 128, %s508_s2, [#allocation5]  }
 0x19c   :  { %427 = dma.done.wait [#allocation5], 128  }
 0x19d   :  { %428 = vsyncadd [#allocation5], 4294967168 }
 0x19e   :  { %315 = vsyncpa [#allocation4], 1 }
 0x19f   :  { %316 = vsyncpa [#allocation7], 1 }
 0x1a0   :  { %317 = vsyncpa [#allocation5], 1 }

</bundles_post_ra>
